<compile_context>
chip_gen: v7x
topology: tpu7x:2x2x1
jax: 0.10.0
libtpu: 0.0.40
codegen_flags: <defaults>
</compile_context>

<pallas_src>
import functools
import math

import jax
import jax.numpy as jnp
from jax import lax
from jax.experimental import pallas as pl
from jax.experimental.pallas import tpu as pltpu

# --- model config (small, synthetic) -----------------------------------------
BATCH = 2
SEQ = 8
HIDDEN = 32
NUM_HEADS = 4
HEAD_DIM = HIDDEN // NUM_HEADS
LN_EPS = 1e-12


def mha_kernel(x_ref, mask_ref, wqkv_ref, bqkv_ref, wd_ref, vec_ref, o_ref,
               *, batch, seq, num_heads, head_dim, eps):
    hidden = num_heads * head_dim

    x = x_ref[...]                                   # (B*S, H) f32

    # Additive key mask, computed & materialized ONCE at full (B, Sq, Sk) so
    # the per-head add needs no re-broadcast.
    neg = (1.0 - mask_ref[...]) * -10000.0           # (B, Sk)
    neg = jnp.broadcast_to(neg[:, None, :], (batch, seq, seq))   # (B, Sq, Sk)

    # Fused Q/K/V projection: one bf16 MXU push with f32 accumulation.
    qkv = (jnp.dot(x.astype(jnp.bfloat16), wqkv_ref[...],
                   preferred_element_type=jnp.float32)
           + bqkv_ref[...])                          # (B*S, 3H) f32

    inv_sqrt_d = 1.0 / math.sqrt(head_dim)
    ctx_parts = []

    # Static loop over heads; each iteration is batched over the batch dim.
    for h in range(num_heads):
        lo = h * head_dim
        q_h = (qkv[:, lo:lo + head_dim]
               .reshape(batch, seq, head_dim).astype(jnp.bfloat16))
        k_h = (qkv[:, hidden + lo:hidden + lo + head_dim]
               .reshape(batch, seq, head_dim).astype(jnp.bfloat16))
        v_h = (qkv[:, 2 * hidden + lo:2 * hidden + lo + head_dim]
               .reshape(batch, seq, head_dim).astype(jnp.bfloat16))

        # scores: (B, Sq, Sk), f32 accumulation; mask added without re-broadcast.
        s = jnp.einsum("bqd,bkd->bqk", q_h, k_h,
                       preferred_element_type=jnp.float32) * inv_sqrt_d + neg

        # softmax along keys (f32 elementwise, EUP reciprocal).
        s_max = jnp.max(s, axis=-1, keepdims=True)
        p = jnp.exp(s - s_max)
        p = p * pl.reciprocal(jnp.sum(p, axis=-1, keepdims=True), approx=True)

        # context: (B, S, Dh)
        ctx = jnp.einsum("bqk,bkd->bqd", p.astype(jnp.bfloat16), v_h,
                         preferred_element_type=jnp.float32)
        ctx_parts.append(ctx.reshape(batch * seq, head_dim))

    # Single fused output dense projection over all heads (one MXU push).
    ctx_all = jnp.concatenate(ctx_parts, axis=-1).astype(jnp.bfloat16)  # (B*S, H)
    attn_out = jnp.dot(ctx_all, wd_ref[...],
                       preferred_element_type=jnp.float32)              # (B*S, H)

    vecs = vec_ref[...]                  # (3, H) f32: [dense bias, ln_gamma, ln_beta]
    bd = vecs[0:1, :]
    ln_g = vecs[1:2, :]
    ln_b = vecs[2:3, :]

    # Residual + LayerNorm (f32).
    y = attn_out + bd + x
    mean = jnp.mean(y, axis=-1, keepdims=True)
    var = jnp.mean((y - mean) * (y - mean), axis=-1, keepdims=True)
    o_ref[...] = (y - mean) * lax.rsqrt(var + eps) * ln_g + ln_b


def pack_params(params):
    """One-time weight pre-pack (hoisted out of the per-call hot path)."""
    wqkv = jnp.concatenate(
        [params["wq"].T, params["wk"].T, params["wv"].T], axis=1
    ).astype(jnp.bfloat16)                                          # (H, 3H)
    bqkv = jnp.concatenate(
        [params["bq"], params["bk"], params["bv"]]
    ).reshape(1, 3 * HIDDEN).astype(jnp.float32)                    # (1, 3H)
    wd = params["wd"].T.astype(jnp.bfloat16)                        # (H, H) (in, out)
    vecs = jnp.stack(
        [params["bd"], params["ln_gamma"], params["ln_beta"]], axis=0
    ).astype(jnp.float32)                                           # (3, H)
    return {"wqkv": wqkv, "bqkv": bqkv, "wd": wd, "vecs": vecs}


def _mha_forward_impl(x, attention_mask, packed):
    """x: (B, S, H) f32, attention_mask: (B, S) f32 (1=keep, 0=mask)."""
    B, S, H = x.shape
    x2 = x.reshape(B * S, H).astype(jnp.float32)
    mask2 = attention_mask.astype(jnp.float32)                      # (B, S)

    kernel = functools.partial(
        mha_kernel, batch=B, seq=S, num_heads=NUM_HEADS, head_dim=HEAD_DIM,
        eps=LN_EPS)

    vmem_spec = pl.BlockSpec(memory_space=pltpu.MemorySpace.VMEM)
    out = pl.pallas_call(
        kernel,
        out_shape=jax.ShapeDtypeStruct((B * S, H), jnp.float32),
        in_specs=[vmem_spec] * 6,
        out_specs=vmem_spec,
    )(x2, mask2, packed["wqkv"], packed["bqkv"], packed["wd"], packed["vecs"])
    return out.reshape(B, S, H)


mha_forward = jax.jit(_mha_forward_impl)


def mha_reference(x, attention_mask, params):
    """Pure-JAX f32 reference mirroring the PyTorch forward (eval mode)."""
    B, S, H = x.shape

    def proj(w, b):
        return x @ w.T + b

    q = proj(params["wq"], params["bq"]).reshape(B, S, NUM_HEADS, HEAD_DIM).transpose(0, 2, 1, 3)
    k = proj(params["wk"], params["bk"]).reshape(B, S, NUM_HEADS, HEAD_DIM).transpose(0, 2, 1, 3)
    v = proj(params["wv"], params["bv"]).reshape(B, S, NUM_HEADS, HEAD_DIM).transpose(0, 2, 1, 3)
    scores = jnp.einsum("bhqd,bhkd->bhqk", q, k) / math.sqrt(HEAD_DIM)
    mask = attention_mask[:, None, None, :]
    scores = scores + (1.0 - mask) * -10000.0
    probs = jax.nn.softmax(scores, axis=-1)
    ctx = jnp.einsum("bhqk,bhkd->bhqd", probs, v)
    ctx = ctx.transpose(0, 2, 1, 3).reshape(B, S, H)
    out = ctx @ params["wd"].T + params["bd"]
    y = out + x
    mean = jnp.mean(y, axis=-1, keepdims=True)
    var = jnp.mean((y - mean) ** 2, axis=-1, keepdims=True)
    return (y - mean) / jnp.sqrt(var + LN_EPS) * params["ln_gamma"] + params["ln_beta"]


def init_params(key):
    ks = jax.random.split(key, 8)

    def w(k):
        return jax.random.normal(k, (HIDDEN, HIDDEN), jnp.float32) * 0.02

    def b(k):
        return jax.random.normal(k, (HIDDEN,), jnp.float32) * 0.02

    return {
        "wq": w(ks[0]), "bq": b(ks[1]),
        "wk": w(ks[2]), "bk": b(ks[3]),
        "wv": w(ks[4]), "bv": b(ks[5]),
        "wd": w(ks[6]), "bd": b(ks[7]),
        "ln_gamma": jnp.ones((HIDDEN,), jnp.float32),
        "ln_beta": jnp.zeros((HIDDEN,), jnp.float32),
    }


if __name__ == "__main__":
    key = jax.random.PRNGKey(0)
    k_x, k_p = jax.random.split(key)
    x = jax.random.normal(k_x, (BATCH, SEQ, HIDDEN), jnp.float32)
    # deterministic mask: first 6 tokens valid, last 2 masked out
    attention_mask = jnp.broadcast_to(
        (jnp.arange(SEQ) < 6).astype(jnp.float32), (BATCH, SEQ))
    params = init_params(k_p)

    # One-time param pre-pack (outside the per-call hot path).
    packed = jax.block_until_ready(pack_params(params))

    out = mha_forward(x, attention_mask, packed)
    out = jax.block_until_ready(out)

    ref = mha_reference(x, attention_mask, params)
    assert out.shape == (BATCH, SEQ, HIDDEN)
    assert bool(jnp.all(jnp.isfinite(out)))
    assert bool(jnp.allclose(out, ref, rtol=2e-2, atol=2e-2)), (
        f"max abs diff {float(jnp.max(jnp.abs(out - ref)))}")
    print("KERNEL_OK")
</pallas_src>

<mosaic_0001>
module attributes {stable_mosaic.version = 11 : i64} {
  func.func @mha_kernel(%arg0: memref<16x32xf32, #tpu.memory_space<vmem>>, %arg1: memref<2x8xf32, #tpu.memory_space<vmem>>, %arg2: memref<32x96xbf16, #tpu.memory_space<vmem>>, %arg3: memref<1x96xf32, #tpu.memory_space<vmem>>, %arg4: memref<32x32xbf16, #tpu.memory_space<vmem>>, %arg5: memref<3x32xf32, #tpu.memory_space<vmem>>, %arg6: memref<16x32xf32, #tpu.memory_space<vmem>>) attributes {dimension_semantics = [], scalar_prefetch = 0 : i64, scratch_operands = 0 : i64, tpu.core_type = #tpu.core_type<tc>} {
    %c0 = arith.constant 0 : index
    %c0_0 = arith.constant 0 : index
    %0 = vector.load %arg0[%c0, %c0_0] : memref<16x32xf32, #tpu.memory_space<vmem>>, vector<16x32xf32>
    %c0_1 = arith.constant 0 : index
    %c0_2 = arith.constant 0 : index
    %1 = vector.load %arg1[%c0_1, %c0_2] : memref<2x8xf32, #tpu.memory_space<vmem>>, vector<2x8xf32>
    %cst = arith.constant 1.000000e+00 : f32
    %2 = vector.broadcast %cst : f32 to vector<2x8xf32>
    %3 = arith.subf %2, %1 : vector<2x8xf32>
    %cst_3 = arith.constant -1.000000e+04 : f32
    %4 = vector.broadcast %cst_3 : f32 to vector<2x8xf32>
    %5 = arith.mulf %3, %4 : vector<2x8xf32>
    %6 = vector.shape_cast %5 : vector<2x8xf32> to vector<2x1x8xf32>
    %7 = vector.shape_cast %6 : vector<2x1x8xf32> to vector<2x1x8xf32>
    %8 = vector.broadcast %7 : vector<2x1x8xf32> to vector<2x8x8xf32>
    %9 = arith.truncf %0 : vector<16x32xf32> to vector<16x32xbf16>
    %c0_4 = arith.constant 0 : index
    %c0_5 = arith.constant 0 : index
    %10 = vector.load %arg2[%c0_4, %c0_5] : memref<32x96xbf16, #tpu.memory_space<vmem>>, vector<32x96xbf16>
    %cst_6 = arith.constant dense<0.000000e+00> : vector<16x96xf32>
    %11 = tpu.matmul %9, %10, %cst_6 {dimension_numbers = #tpu.dot_dimension_numbers<[1], [0], [0], [1], [0, 0, 1, 1], [], []>} : vector<16x32xbf16>, vector<32x96xbf16>, vector<16x96xf32> -> vector<16x96xf32>
    %c0_7 = arith.constant 0 : index
    %c0_8 = arith.constant 0 : index
    %12 = vector.load %arg3[%c0_7, %c0_8] : memref<1x96xf32, #tpu.memory_space<vmem>>, vector<1x96xf32>
    %13 = vector.broadcast %12 : vector<1x96xf32> to vector<16x96xf32>
    %14 = arith.addf %11, %13 : vector<16x96xf32>
    %15 = vector.extract_strided_slice %14 {offsets = [0, 0], sizes = [16, 8], strides = [1, 1]} : vector<16x96xf32> to vector<16x8xf32>
    %16 = vector.shape_cast %15 : vector<16x8xf32> to vector<2x8x8xf32>
    %17 = arith.truncf %16 : vector<2x8x8xf32> to vector<2x8x8xbf16>
    %18 = vector.extract_strided_slice %14 {offsets = [0, 32], sizes = [16, 8], strides = [1, 1]} : vector<16x96xf32> to vector<16x8xf32>
    %19 = vector.shape_cast %18 : vector<16x8xf32> to vector<2x8x8xf32>
    %20 = arith.truncf %19 : vector<2x8x8xf32> to vector<2x8x8xbf16>
    %21 = vector.extract_strided_slice %14 {offsets = [0, 64], sizes = [16, 8], strides = [1, 1]} : vector<16x96xf32> to vector<16x8xf32>
    %22 = vector.shape_cast %21 : vector<16x8xf32> to vector<2x8x8xf32>
    %23 = arith.truncf %22 : vector<2x8x8xf32> to vector<2x8x8xbf16>
    "tpu.trace_start"() <{level = 10 : i32, message = "bqd,bkd->bqk"}> : () -> ()
    %cst_9 = arith.constant dense<0.000000e+00> : vector<2x8x8xf32>
    %24 = tpu.matmul %17, %20, %cst_9 {dimension_numbers = #tpu.dot_dimension_numbers<[2], [2], [1], [1], [0, 0, 0, 1, 1, 1], [0], [0]>} : vector<2x8x8xbf16>, vector<2x8x8xbf16>, vector<2x8x8xf32> -> vector<2x8x8xf32>
    "tpu.trace_stop"() : () -> ()
    %cst_10 = arith.constant 0.353553385 : f32
    %25 = vector.broadcast %cst_10 : f32 to vector<2x8x8xf32>
    %26 = arith.mulf %24, %25 : vector<2x8x8xf32>
    %27 = arith.addf %26, %8 : vector<2x8x8xf32>
    %cst_11 = arith.constant dense<0xFF800000> : vector<2x8xf32>
    %28 = vector.multi_reduction <maximumf>, %27, %cst_11 [2] : vector<2x8x8xf32> to vector<2x8xf32>
    %29 = vector.shape_cast %28 : vector<2x8xf32> to vector<2x8x1xf32>
    %30 = vector.broadcast %29 : vector<2x8x1xf32> to vector<2x8x8xf32>
    %31 = arith.subf %27, %30 : vector<2x8x8xf32>
    %32 = math.exp %31 : vector<2x8x8xf32>
    %cst_12 = arith.constant dense<0.000000e+00> : vector<2x8xf32>
    %33 = vector.multi_reduction <add>, %32, %cst_12 [2] : vector<2x8x8xf32> to vector<2x8xf32>
    %34 = vector.shape_cast %33 : vector<2x8xf32> to vector<2x8x1xf32>
    %35 = tpu.reciprocal %34 {approx = true} : vector<2x8x1xf32> -> vector<2x8x1xf32>
    %36 = vector.broadcast %35 : vector<2x8x1xf32> to vector<2x8x8xf32>
    %37 = arith.mulf %32, %36 : vector<2x8x8xf32>
    %38 = arith.truncf %37 : vector<2x8x8xf32> to vector<2x8x8xbf16>
    "tpu.trace_start"() <{level = 10 : i32, message = "bqk,bkd->bqd"}> : () -> ()
    %cst_13 = arith.constant dense<0.000000e+00> : vector<2x8x8xf32>
    %39 = tpu.matmul %38, %23, %cst_13 {dimension_numbers = #tpu.dot_dimension_numbers<[2], [1], [1], [2], [0, 0, 0, 1, 1, 2], [0], [0]>} : vector<2x8x8xbf16>, vector<2x8x8xbf16>, vector<2x8x8xf32> -> vector<2x8x8xf32>
    "tpu.trace_stop"() : () -> ()
    %40 = vector.shape_cast %39 : vector<2x8x8xf32> to vector<16x8xf32>
    %41 = vector.extract_strided_slice %14 {offsets = [0, 8], sizes = [16, 8], strides = [1, 1]} : vector<16x96xf32> to vector<16x8xf32>
    %42 = vector.shape_cast %41 : vector<16x8xf32> to vector<2x8x8xf32>
    %43 = arith.truncf %42 : vector<2x8x8xf32> to vector<2x8x8xbf16>
    %44 = vector.extract_strided_slice %14 {offsets = [0, 40], sizes = [16, 8], strides = [1, 1]} : vector<16x96xf32> to vector<16x8xf32>
    %45 = vector.shape_cast %44 : vector<16x8xf32> to vector<2x8x8xf32>
    %46 = arith.truncf %45 : vector<2x8x8xf32> to vector<2x8x8xbf16>
    %47 = vector.extract_strided_slice %14 {offsets = [0, 72], sizes = [16, 8], strides = [1, 1]} : vector<16x96xf32> to vector<16x8xf32>
    %48 = vector.shape_cast %47 : vector<16x8xf32> to vector<2x8x8xf32>
    %49 = arith.truncf %48 : vector<2x8x8xf32> to vector<2x8x8xbf16>
    "tpu.trace_start"() <{level = 10 : i32, message = "bqd,bkd->bqk"}> : () -> ()
    %cst_14 = arith.constant dense<0.000000e+00> : vector<2x8x8xf32>
    %50 = tpu.matmul %43, %46, %cst_14 {dimension_numbers = #tpu.dot_dimension_numbers<[2], [2], [1], [1], [0, 0, 0, 1, 1, 1], [0], [0]>} : vector<2x8x8xbf16>, vector<2x8x8xbf16>, vector<2x8x8xf32> -> vector<2x8x8xf32>
    "tpu.trace_stop"() : () -> ()
    %cst_15 = arith.constant 0.353553385 : f32
    %51 = vector.broadcast %cst_15 : f32 to vector<2x8x8xf32>
    %52 = arith.mulf %50, %51 : vector<2x8x8xf32>
    %53 = arith.addf %52, %8 : vector<2x8x8xf32>
    %cst_16 = arith.constant dense<0xFF800000> : vector<2x8xf32>
    %54 = vector.multi_reduction <maximumf>, %53, %cst_16 [2] : vector<2x8x8xf32> to vector<2x8xf32>
    %55 = vector.shape_cast %54 : vector<2x8xf32> to vector<2x8x1xf32>
    %56 = vector.broadcast %55 : vector<2x8x1xf32> to vector<2x8x8xf32>
    %57 = arith.subf %53, %56 : vector<2x8x8xf32>
    %58 = math.exp %57 : vector<2x8x8xf32>
    %cst_17 = arith.constant dense<0.000000e+00> : vector<2x8xf32>
    %59 = vector.multi_reduction <add>, %58, %cst_17 [2] : vector<2x8x8xf32> to vector<2x8xf32>
    %60 = vector.shape_cast %59 : vector<2x8xf32> to vector<2x8x1xf32>
    %61 = tpu.reciprocal %60 {approx = true} : vector<2x8x1xf32> -> vector<2x8x1xf32>
    %62 = vector.broadcast %61 : vector<2x8x1xf32> to vector<2x8x8xf32>
    %63 = arith.mulf %58, %62 : vector<2x8x8xf32>
    %64 = arith.truncf %63 : vector<2x8x8xf32> to vector<2x8x8xbf16>
    "tpu.trace_start"() <{level = 10 : i32, message = "bqk,bkd->bqd"}> : () -> ()
    %cst_18 = arith.constant dense<0.000000e+00> : vector<2x8x8xf32>
    %65 = tpu.matmul %64, %49, %cst_18 {dimension_numbers = #tpu.dot_dimension_numbers<[2], [1], [1], [2], [0, 0, 0, 1, 1, 2], [0], [0]>} : vector<2x8x8xbf16>, vector<2x8x8xbf16>, vector<2x8x8xf32> -> vector<2x8x8xf32>
    "tpu.trace_stop"() : () -> ()
    %66 = vector.shape_cast %65 : vector<2x8x8xf32> to vector<16x8xf32>
    %67 = vector.extract_strided_slice %14 {offsets = [0, 16], sizes = [16, 8], strides = [1, 1]} : vector<16x96xf32> to vector<16x8xf32>
    %68 = vector.shape_cast %67 : vector<16x8xf32> to vector<2x8x8xf32>
    %69 = arith.truncf %68 : vector<2x8x8xf32> to vector<2x8x8xbf16>
    %70 = vector.extract_strided_slice %14 {offsets = [0, 48], sizes = [16, 8], strides = [1, 1]} : vector<16x96xf32> to vector<16x8xf32>
    %71 = vector.shape_cast %70 : vector<16x8xf32> to vector<2x8x8xf32>
    %72 = arith.truncf %71 : vector<2x8x8xf32> to vector<2x8x8xbf16>
    %73 = vector.extract_strided_slice %14 {offsets = [0, 80], sizes = [16, 8], strides = [1, 1]} : vector<16x96xf32> to vector<16x8xf32>
    %74 = vector.shape_cast %73 : vector<16x8xf32> to vector<2x8x8xf32>
    %75 = arith.truncf %74 : vector<2x8x8xf32> to vector<2x8x8xbf16>
    "tpu.trace_start"() <{level = 10 : i32, message = "bqd,bkd->bqk"}> : () -> ()
    %cst_19 = arith.constant dense<0.000000e+00> : vector<2x8x8xf32>
    %76 = tpu.matmul %69, %72, %cst_19 {dimension_numbers = #tpu.dot_dimension_numbers<[2], [2], [1], [1], [0, 0, 0, 1, 1, 1], [0], [0]>} : vector<2x8x8xbf16>, vector<2x8x8xbf16>, vector<2x8x8xf32> -> vector<2x8x8xf32>
    "tpu.trace_stop"() : () -> ()
    %cst_20 = arith.constant 0.353553385 : f32
    %77 = vector.broadcast %cst_20 : f32 to vector<2x8x8xf32>
    %78 = arith.mulf %76, %77 : vector<2x8x8xf32>
    %79 = arith.addf %78, %8 : vector<2x8x8xf32>
    %cst_21 = arith.constant dense<0xFF800000> : vector<2x8xf32>
    %80 = vector.multi_reduction <maximumf>, %79, %cst_21 [2] : vector<2x8x8xf32> to vector<2x8xf32>
    %81 = vector.shape_cast %80 : vector<2x8xf32> to vector<2x8x1xf32>
    %82 = vector.broadcast %81 : vector<2x8x1xf32> to vector<2x8x8xf32>
    %83 = arith.subf %79, %82 : vector<2x8x8xf32>
    %84 = math.exp %83 : vector<2x8x8xf32>
    %cst_22 = arith.constant dense<0.000000e+00> : vector<2x8xf32>
    %85 = vector.multi_reduction <add>, %84, %cst_22 [2] : vector<2x8x8xf32> to vector<2x8xf32>
    %86 = vector.shape_cast %85 : vector<2x8xf32> to vector<2x8x1xf32>
    %87 = tpu.reciprocal %86 {approx = true} : vector<2x8x1xf32> -> vector<2x8x1xf32>
    %88 = vector.broadcast %87 : vector<2x8x1xf32> to vector<2x8x8xf32>
    %89 = arith.mulf %84, %88 : vector<2x8x8xf32>
    %90 = arith.truncf %89 : vector<2x8x8xf32> to vector<2x8x8xbf16>
    "tpu.trace_start"() <{level = 10 : i32, message = "bqk,bkd->bqd"}> : () -> ()
    %cst_23 = arith.constant dense<0.000000e+00> : vector<2x8x8xf32>
    %91 = tpu.matmul %90, %75, %cst_23 {dimension_numbers = #tpu.dot_dimension_numbers<[2], [1], [1], [2], [0, 0, 0, 1, 1, 2], [0], [0]>} : vector<2x8x8xbf16>, vector<2x8x8xbf16>, vector<2x8x8xf32> -> vector<2x8x8xf32>
    "tpu.trace_stop"() : () -> ()
    %92 = vector.shape_cast %91 : vector<2x8x8xf32> to vector<16x8xf32>
    %93 = vector.extract_strided_slice %14 {offsets = [0, 24], sizes = [16, 8], strides = [1, 1]} : vector<16x96xf32> to vector<16x8xf32>
    %94 = vector.shape_cast %93 : vector<16x8xf32> to vector<2x8x8xf32>
    %95 = arith.truncf %94 : vector<2x8x8xf32> to vector<2x8x8xbf16>
    %96 = vector.extract_strided_slice %14 {offsets = [0, 56], sizes = [16, 8], strides = [1, 1]} : vector<16x96xf32> to vector<16x8xf32>
    %97 = vector.shape_cast %96 : vector<16x8xf32> to vector<2x8x8xf32>
    %98 = arith.truncf %97 : vector<2x8x8xf32> to vector<2x8x8xbf16>
    %99 = vector.extract_strided_slice %14 {offsets = [0, 88], sizes = [16, 8], strides = [1, 1]} : vector<16x96xf32> to vector<16x8xf32>
    %100 = vector.shape_cast %99 : vector<16x8xf32> to vector<2x8x8xf32>
    %101 = arith.truncf %100 : vector<2x8x8xf32> to vector<2x8x8xbf16>
    "tpu.trace_start"() <{level = 10 : i32, message = "bqd,bkd->bqk"}> : () -> ()
    %cst_24 = arith.constant dense<0.000000e+00> : vector<2x8x8xf32>
    %102 = tpu.matmul %95, %98, %cst_24 {dimension_numbers = #tpu.dot_dimension_numbers<[2], [2], [1], [1], [0, 0, 0, 1, 1, 1], [0], [0]>} : vector<2x8x8xbf16>, vector<2x8x8xbf16>, vector<2x8x8xf32> -> vector<2x8x8xf32>
    "tpu.trace_stop"() : () -> ()
    %cst_25 = arith.constant 0.353553385 : f32
    %103 = vector.broadcast %cst_25 : f32 to vector<2x8x8xf32>
    %104 = arith.mulf %102, %103 : vector<2x8x8xf32>
    %105 = arith.addf %104, %8 : vector<2x8x8xf32>
    %cst_26 = arith.constant dense<0xFF800000> : vector<2x8xf32>
    %106 = vector.multi_reduction <maximumf>, %105, %cst_26 [2] : vector<2x8x8xf32> to vector<2x8xf32>
    %107 = vector.shape_cast %106 : vector<2x8xf32> to vector<2x8x1xf32>
    %108 = vector.broadcast %107 : vector<2x8x1xf32> to vector<2x8x8xf32>
    %109 = arith.subf %105, %108 : vector<2x8x8xf32>
    %110 = math.exp %109 : vector<2x8x8xf32>
    %cst_27 = arith.constant dense<0.000000e+00> : vector<2x8xf32>
    %111 = vector.multi_reduction <add>, %110, %cst_27 [2] : vector<2x8x8xf32> to vector<2x8xf32>
    %112 = vector.shape_cast %111 : vector<2x8xf32> to vector<2x8x1xf32>
    %113 = tpu.reciprocal %112 {approx = true} : vector<2x8x1xf32> -> vector<2x8x1xf32>
    %114 = vector.broadcast %113 : vector<2x8x1xf32> to vector<2x8x8xf32>
    %115 = arith.mulf %110, %114 : vector<2x8x8xf32>
    %116 = arith.truncf %115 : vector<2x8x8xf32> to vector<2x8x8xbf16>
    "tpu.trace_start"() <{level = 10 : i32, message = "bqk,bkd->bqd"}> : () -> ()
    %cst_28 = arith.constant dense<0.000000e+00> : vector<2x8x8xf32>
    %117 = tpu.matmul %116, %101, %cst_28 {dimension_numbers = #tpu.dot_dimension_numbers<[2], [1], [1], [2], [0, 0, 0, 1, 1, 2], [0], [0]>} : vector<2x8x8xbf16>, vector<2x8x8xbf16>, vector<2x8x8xf32> -> vector<2x8x8xf32>
    "tpu.trace_stop"() : () -> ()
    %118 = vector.shape_cast %117 : vector<2x8x8xf32> to vector<16x8xf32>
    %119 = tpu.concatenate %40, %66, %92, %118 in 1 : vector<16x8xf32>, vector<16x8xf32>, vector<16x8xf32>, vector<16x8xf32> -> vector<16x32xf32>
    %120 = arith.truncf %119 : vector<16x32xf32> to vector<16x32xbf16>
    %c0_29 = arith.constant 0 : index
    %c0_30 = arith.constant 0 : index
    %121 = vector.load %arg4[%c0_29, %c0_30] : memref<32x32xbf16, #tpu.memory_space<vmem>>, vector<32x32xbf16>
    %cst_31 = arith.constant dense<0.000000e+00> : vector<16x32xf32>
    %122 = tpu.matmul %120, %121, %cst_31 {dimension_numbers = #tpu.dot_dimension_numbers<[1], [0], [0], [1], [0, 0, 1, 1], [], []>} : vector<16x32xbf16>, vector<32x32xbf16>, vector<16x32xf32> -> vector<16x32xf32>
    %c0_32 = arith.constant 0 : index
    %c0_33 = arith.constant 0 : index
    %123 = vector.load %arg5[%c0_32, %c0_33] : memref<3x32xf32, #tpu.memory_space<vmem>>, vector<3x32xf32>
    %124 = vector.extract_strided_slice %123 {offsets = [0, 0], sizes = [1, 32], strides = [1, 1]} : vector<3x32xf32> to vector<1x32xf32>
    %125 = vector.extract_strided_slice %123 {offsets = [1, 0], sizes = [1, 32], strides = [1, 1]} : vector<3x32xf32> to vector<1x32xf32>
    %126 = vector.extract_strided_slice %123 {offsets = [2, 0], sizes = [1, 32], strides = [1, 1]} : vector<3x32xf32> to vector<1x32xf32>
    %127 = vector.broadcast %124 : vector<1x32xf32> to vector<16x32xf32>
    %128 = arith.addf %122, %127 : vector<16x32xf32>
    %129 = arith.addf %128, %0 : vector<16x32xf32>
    %cst_34 = arith.constant dense<0.000000e+00> : vector<16xf32>
    %130 = vector.multi_reduction <add>, %129, %cst_34 [1] : vector<16x32xf32> to vector<16xf32>
    %131 = vector.shape_cast %130 : vector<16xf32> to vector<16x1xf32>
    %cst_35 = arith.constant 3.200000e+01 : f32
    %132 = vector.broadcast %cst_35 : f32 to vector<16x1xf32>
    %133 = arith.divf %131, %132 : vector<16x1xf32>
    %134 = vector.broadcast %133 : vector<16x1xf32> to vector<16x32xf32>
    %135 = arith.subf %129, %134 : vector<16x32xf32>
    %136 = vector.broadcast %133 : vector<16x1xf32> to vector<16x32xf32>
    %137 = arith.subf %129, %136 : vector<16x32xf32>
    %138 = arith.mulf %135, %137 : vector<16x32xf32>
    %cst_36 = arith.constant dense<0.000000e+00> : vector<16xf32>
    %139 = vector.multi_reduction <add>, %138, %cst_36 [1] : vector<16x32xf32> to vector<16xf32>
    %140 = vector.shape_cast %139 : vector<16xf32> to vector<16x1xf32>
    %cst_37 = arith.constant 3.200000e+01 : f32
    %141 = vector.broadcast %cst_37 : f32 to vector<16x1xf32>
    %142 = arith.divf %140, %141 : vector<16x1xf32>
    %143 = vector.broadcast %133 : vector<16x1xf32> to vector<16x32xf32>
    %144 = arith.subf %129, %143 : vector<16x32xf32>
    %cst_38 = arith.constant 9.99999996E-13 : f32
    %145 = vector.broadcast %cst_38 : f32 to vector<16x1xf32>
    %146 = arith.addf %142, %145 : vector<16x1xf32>
    %147 = math.rsqrt %146 : vector<16x1xf32>
    %148 = vector.broadcast %147 : vector<16x1xf32> to vector<16x32xf32>
    %149 = arith.mulf %144, %148 : vector<16x32xf32>
    %150 = vector.broadcast %125 : vector<1x32xf32> to vector<16x32xf32>
    %151 = arith.mulf %149, %150 : vector<16x32xf32>
    %152 = vector.broadcast %126 : vector<1x32xf32> to vector<16x32xf32>
    %153 = arith.addf %151, %152 : vector<16x32xf32>
    %c0_39 = arith.constant 0 : index
    %c0_40 = arith.constant 0 : index
    %154 = vector.load %arg6[%c0_39, %c0_40] : memref<16x32xf32, #tpu.memory_space<vmem>>, vector<16x32xf32>
    tpu.vector_store %arg6[%c0_39, %c0_40], %153 {strides = array<i32>} : memref<16x32xf32, #tpu.memory_space<vmem>>, vector<16x32xf32>,
    return
  }
}

</mosaic_0001>

<bundles_post_ra>
// kernel: _mha_forward_impl.1
= control target key start
LH: loop header
LB: loop body
LE: loop exit
PB: predicated region body
PF: predicated region fallthrough
CT: control target
= control target key end

     0   :  { %11 = vsyncpa [#allocation3], 0  ;;  %s1897_s0 = inlined_call_operand.hbm [shape: f32[16,32], index: 0, kind: input, shape index: {}]   ;;  %s1898_s1 = inlined_call_operand.vmem [shape: f32[2,8], index: 1, kind: input, shape index: {}]   ;;  %s1899_s2 = inlined_call_operand.vmem [shape: bf16[32,96], index: 2, kind: input, shape index: {}]   ;;  %s1900_s3 = inlined_call_operand.hbm [shape: f32[1,96], index: 3, kind: input, shape index: {}]   ;;  %s1901_s4 = inlined_call_operand.hbm [shape: bf16[32,32], index: 4, kind: input, shape index: {}]   ;;  %s1902_s5 = inlined_call_operand.vmem [shape: f32[3,32], index: 5, kind: input, shape index: {}]   ;;  %s1903_s6 = inlined_call_operand.hbm [shape: f32[16,32], index: 6, kind: output, shape index: {}]  }
   0x1   :  { %12 = vsyncpa [#allocation6], 0 }
   0x2   :  { %13 = vsyncpa [#allocation4], 0  ;;  %s1573_s21 = smov [#allocation5]   ;;  %s1574_s23 = smov [#allocation2]  }
   0x3   :  { %s36_s22 = sshll.u32 %s1573_s21, 4  ;;  %s19_s24 = sshll.u32 %s1574_s23, 4  ;;  %s37_s22 = int_to_ptr.vmem [resolvable:$true] %s36_s22  ;;  %s1631_s24 = int_to_ptr.vmem [resolvable:$true] %s19_s24 }
   0x4   :  { %s1479_s27 = scalar_lea.hbm %s1900_s3, 16 }
   0x5   :  { %p1480_p0 = scmp.ne.s32.totalorder %s1900_s3, %s1479_s27  ;;  %p1483_p1 = scmp.lt.u32.totalorder %s1479_s27, %s1900_s3 }
   0x7   :  { %p1485_p2 = pnand %p1483_p1, %p1480_p0 }
   0x9   :  { %1488 = shalt.err (!%p1485_p2)
}
   0xa   :  { %s1489_s8 = scalar_lea.vmem %s37_s22, 16  ;;  %s1493_s9 = scalar_lea.vmem %s37_s22, 32 }
   0xb   :  { %p1490_p3 = scmp.ne.s32.totalorder %s37_s22, %s1489_s8  ;;  %p1494_p4 = scmp.lt.s32.totalorder %s37_s22, %s37_s22 }
   0xc   :  { %p1495_p5 = scmp.lt.s32.totalorder %s1493_s9, %s1489_s8 }
   0xe   :  { %p1496_p6 = por %p1495_p5, %p1494_p4 }
  0x10   :  { %p1497_p7 = pnand %p1496_p6, %p1490_p3 }
  0x12   :  { %1500 = shalt.err (!%p1497_p7)
}
  0x13   :  { %39 = dma.hbm_to_vmem [thread:$0]  %s1900_s3, 16, %s37_s22, [#allocation6]  }
  0x14   :  { %s1501_s14 = scalar_lea.hbm %s1897_s0, 256 }
  0x15   :  { %p1502_p8 = scmp.ne.s32.totalorder %s1897_s0, %s1501_s14  ;;  %p1505_p9 = scmp.lt.u32.totalorder %s1501_s14, %s1897_s0 }
  0x17   :  { %p1507_p10 = pnand %p1505_p9, %p1502_p8 }
  0x19   :  { %1510 = shalt.err (!%p1507_p10)
}
  0x1a   :  { %s1511_s19 = scalar_lea.vmem %s1631_s24, 256  ;;  %p1516_p12 = scmp.lt.s32.totalorder %s1631_s24, %s1631_s24 }
  0x1b   :  { %p1512_p11 = scmp.ne.s32.totalorder %s1631_s24, %s1511_s19  ;;  %p1517_p13 = scmp.lt.s32.totalorder %s1511_s19, %s1511_s19 }
  0x1d   :  { %p1518_p0 = por %p1517_p13, %p1516_p12 }
  0x1f   :  { %p1519_p1 = pnand %p1518_p0, %p1512_p11 }
  0x21   :  { %1522 = shalt.err (!%p1519_p1)
}
  0x22   :  { %s1575_s3 = smov 128   ;;  %s1576_s20 = smov 8  }
  0x23   :  { %25 = dma.hbm_to_vmem [thread:$0]  %s1897_s0, 256, %s1631_s24, [#allocation3], %s1575_s3, %s1575_s3, %s1576_s20  }
  0x24   :  { %s1577_s23 = smov [#allocation7]   ;;  %s1523_s28 = scalar_lea.hbm %s1901_s4, 256 }
  0x25   :  { %s45_s25 = sshll.u32 %s1577_s23, 4  ;;  %p1524_p2 = scmp.ne.s32.totalorder %s1901_s4, %s1523_s28  ;;  %s46_s25 = int_to_ptr.vmem [resolvable:$true] %s45_s25 }
  0x26   :  { %p1527_p3 = scmp.lt.u32.totalorder %s1523_s28, %s1901_s4 }
  0x28   :  { %p1529_p4 = pnand %p1527_p3, %p1524_p2 }
  0x2a   :  { %1532 = shalt.err (!%p1529_p4)
}
  0x2b   :  { %s1533_s9 = scalar_lea.vmem %s46_s25, 256  ;;  %p1538_p6 = scmp.lt.s32.totalorder %s46_s25, %s46_s25 }
  0x2c   :  { %p1534_p5 = scmp.ne.s32.totalorder %s46_s25, %s1533_s9  ;;  %p1539_p7 = scmp.lt.s32.totalorder %s1533_s9, %s1533_s9 }
  0x2e   :  { %p1540_p8 = por %p1539_p7, %p1538_p6 }
  0x30   :  { %p1541_p9 = pnand %p1540_p8, %p1534_p5 }
  0x32   :  { %1544 = shalt.err (!%p1541_p9)
}
  0x33   :  { %s1578_s0 = smov 64   ;;  %s1579_s24 = smov 4  }
  0x34   :  { %51 = dma.hbm_to_vmem [thread:$0]  %s1901_s4, 256, %s46_s25, [#allocation6], %s1578_s0, %s1578_s0, %s1579_s24  }
  0x35   :  { %1567 = dma.done.wait [#allocation3], 256  }
  0x36   :  { %1568 = vsyncadd [#allocation3], 4294967040 }
  0x37   :  { %1569 = dma.done.wait [#allocation6], 272  }
  0x38   :  { %1570 = vsyncadd [#allocation6], 4294967024  ;;  %v1580_v0 = vmov 0.0   ;;  %vm1581_vm0 = vmmov 0   ;;  %v1439_v1 = vld [vmem:[%s1899_s2] sm:$0xff]   ;;  %v1440_v2 = vld [vmem:[%s1899_s2 + $0x8] sm:$0xff]   ;;  %v73_v21 = vlaneseq }
  0x39   :  { %1289 = vmatprep.subr.bf16.mxu0 %v1580_v0  ;;  %1293 = vmatprep.mubr.msk.bf16.mxu0 %vm1581_vm0, %v1580_v0  ;;  %v1691_v3 = vld [vmem:[#allocation2] sm:$0xff]  ;;  %v1693_v4 = vld [vmem:[#allocation2 + $0x8] sm:$0xff]  ;;  %vm126_vm1 = vcmask 261120   ;;  %v1228_v6 = vld [vmem:[#allocation5] ss:$0 sm:$0xff]  ;;  %s1582_s2 = smov 96  }
  0x3a   :  { %1297 = vmatprep.subr.bf16.mxu1 %v1580_v0  ;;  %1299 = vmatprep.mubr.msk.bf16.mxu1 %vm1581_vm0, %v1580_v0  ;;  %v102_v5 = vpack.c.bf16 %v1693_v4, %v1691_v3  ;;  %vm176_vm2 = vcmask 64512   ;;  %v1583_v19 = vmov 1966171168   ;;  %v66_v22 = vld [vmem:[%s1898_s1] sm:$0x3]  ;;  %v1723_v25 = vshrl.u32 %v73_v21, 7 }
  0x3b   :  { %1290 = vmatpush3.bf16.msra.mxu0 %v1439_v1  ;;  %v71_v20 = vunpack.c.l.s4 %v1583_v19  ;;  %v67_v23 = vsub.f32 1.0, %v66_v22  ;;  %s1584_s1 = smov 88   ;;  %vm305_vm3 = vcmask 1043456   ;;  %s1585_s17 = smov 120   ;;  %vm1095_vm4 = vcmask 130048  }
  0x3c   :  { %1291 = vmatprep.subr.bf16.mxu0 %v1580_v0  ;;  %v1727_v30 = vsub.s32 0, %v1723_v25  ;;  %s1586_s18 = smov 56   ;;  %s1587_s19 = smov 80   ;;  %vm1098_vm5 = vcmask 195584  }
  0x3d   :  { %v72_v24 = vunpack.c.0.s8 %v71_v20  ;;  %v68_v26 = vmul.f32 -10000.0, %v67_v23  ;;  %s1588_s21 = smov 112   ;;  %s1589_s22 = smov 48  }
  0x3e   :  { %s1590_s23 = smov 72   ;;  %s1591_s25 = smov 104  }
  0x3f   :  { %1292 = vmatpush3.bf16.msra.mxu0 %v1440_v2  ;;  %v75_v27 = vsub.s32 %v72_v24, %v1723_v25  ;;  %s1592_s26 = smov 40   ;;  %s1593_s27 = smov 16  }
  0x40   :  { %1303 = vmatprep.subr.bf16.mxu0 %v1580_v0  ;;  %s1594_s28 = smov 24  }
  0x41   :  { %v76_v28 = vrot.slane %v68_v26, %v75_v27 }
  0x42   :  { %1294 = vmatmul.mubr.msk.bf16.vlgmr.msra.gmra.mrb[0].mxu0 %vm126_vm1, %v102_v5 }
  0x43   :  { %1305 = vmatprep.mubr.msk.bf16.mxu0 %vm1581_vm0, %v1580_v0  ;;  %v84_v29 = vrot.slane %v76_v28, %v75_v27  ;;  %v77_v31 = vcombine.high %v76_v28, %v76_v28 }
  0x45   :  { %v1730_v32 = vrot.slane %v84_v29, %v1727_v30  ;;  %v91_v33 = vrot.slane %v77_v31, %v75_v27 }
  0x47   :  { %v1734_v40 = vrot.slane %v91_v33, %v1727_v30 }
 0x115   :  { %v164_v7 = vpop.f32.mrb[0].mxu0 }
 0x116   :  { %v165_v8 = vadd.f32 %v1228_v6, %v164_v7  ;;  %v1295_v9 = vpop.f32.mrb[1].mxu0 }
 0x117   :  { %v167_v10 = vpop.f32.mrb[2].mxu0 }
 0x118   :  { %v1702_v11 = vpack.c.bf16 %v165_v8, %v165_v8  ;;  %v168_v12 = vadd.f32 %v1228_v6, %v167_v10  ;;  %v1296_v13 = vpop.f32.mrb[3].mxu0 }
 0x11a   :  { %174 = vrot.lane.b32.xlu0 %v1702_v11, %s1582_s2  ;;  %v1705_v14 = vpack.c.bf16 %v168_v12, %v168_v12 }
 0x11e   :  { %224 = vrot.lane.b32.xlu0 %v1705_v14, %s1582_s2 }
 0x18c   :  { %v175_v15 = vpop.permute.xlu0 %174 }
 0x18d   :  { %v181_v16 = vsel %vm176_vm2, %v175_v15, 0 }
 0x18e   :  { %1298 = vmatpush3.bf16.xpose.msra.mxu1 %v181_v16 }
 0x18f   :  { %1309 = vmatprep.subr.bf16.mxu1 %v1580_v0 }
 0x190   :  { %v225_v17 = vpop.permute.xlu0 %224 }
 0x191   :  { %v230_v18 = vsel %vm176_vm2, %v225_v17, 0 }
 0x192   :  { %1304 = vmatpush3.bf16.xpose.msra.mxu0 %v230_v18 }
 0x193   :  { %1315 = vmatprep.subr.bf16.mxu0 %v1580_v0 }
 0x195   :  { %1300 = vmatmul.mubr.msk.bf16.vlgmr.msra.gmra.mrb[0].mxu1 %vm176_vm2, %v1702_v11 }
 0x196   :  { %1311 = vmatprep.mubr.msk.bf16.mxu1 %vm1581_vm0, %v1580_v0 }
 0x199   :  { %1306 = vmatmul.mubr.msk.bf16.vlgmr.msra.gmra.mrb[4].mxu0 %vm176_vm2, %v1705_v14 }
 0x19a   :  { %1317 = vmatprep.mubr.msk.bf16.mxu0 %vm1581_vm0, %v1580_v0 }
 0x268   :  { %v217_v34 = vpop.f32.mrb[0].mxu1 }
 0x269   :  { %v272_v35 = vmul.f32 0.35355338, %v217_v34  ;;  %v1301_v36 = vpop.f32.mrb[1].mxu1 }
 0x26a   :  { %v220_v37 = vpop.f32.mrb[2].mxu1 }
 0x26b   :  { %v1302_v38 = vpop.f32.mrb[3].mxu1  ;;  %v274_v39 = vadd.f32 %v272_v35, %v1730_v32 }
 0x26c   :  { %v266_v41 = vpop.f32.mrb[4].mxu0 }
 0x26d   :  { %v273_v42 = vmul.f32 0.35355338, %v266_v41  ;;  %v1307_v43 = vpop.f32.mrb[5].mxu0  ;;  %v276_v44 = vsel %vm176_vm2, %v274_v39, -inf }
 0x26e   :  { %277 = vmax.xlane.f32.xlu1 %v276_v44  ;;  %v269_v45 = vpop.f32.mrb[6].mxu0 }
 0x26f   :  { %v1308_v46 = vpop.f32.mrb[7].mxu0  ;;  %v275_v47 = vadd.f32 %v273_v42, %v1734_v40 }
 0x271   :  { %v279_v48 = vsel %vm176_vm2, %v275_v47, -inf }
 0x272   :  { %280 = vmax.xlane.f32.xlu1 %v279_v48 }
 0x283   :  { %300 = vrot.lane.b32.xlu1 %v1702_v11, %s1578_s0 }
 0x287   :  { %349 = vrot.lane.b32.xlu1 %v1705_v14, %s1578_s0 }
 0x28b   :  { %399 = vrot.lane.b32.xlu1 %v1702_v11, %s1584_s1 }
 0x2fb   :  { %v278_v49 = vpop.xlane.xlu1 %277 }
 0x2fc   :  { %v282_v50 = vsub.f32 %v274_v39, %v278_v49 }
 0x2fe   :  { %v284_v51 = vmul.f32 1.442695, %v282_v50 }
 0x2ff   :  { %v281_v52 = vpop.xlane.xlu1 %280 }
 0x300   :  { %1443 = vpow2.f32 %v284_v51  ;;  %v283_v53 = vsub.f32 %v275_v47, %v281_v52 }
 0x302   :  { %v286_v54 = vmul.f32 1.442695, %v283_v53 }
 0x303   :  { %v301_v55 = vpop.permute.xlu1 %300 }
 0x304   :  { %1445 = vpow2.f32 %v286_v54  ;;  %v307_v56 = vsel %vm305_vm3, %v301_v55, 0 }
 0x305   :  { %1310 = vmatpush3.bf16.msra.mxu1 %v307_v56 }
 0x306   :  { %1321 = vmatprep.subr.bf16.mxu1 %v1580_v0 }
 0x307   :  { %v350_v57 = vpop.permute.xlu1 %349 }
 0x308   :  { %v355_v58 = vsel %vm305_vm3, %v350_v57, 0 }
 0x309   :  { %1316 = vmatpush3.bf16.msra.mxu0 %v355_v58 }
 0x30a   :  { %v1444_v59 = vpop.eup %1443  ;;  %1327 = vmatprep.subr.bf16.mxu0 %v1580_v0 }
 0x30b   :  { %v288_v60 = vsel %vm176_vm2, %v1444_v59, 0.0  ;;  %v400_v63 = vpop.permute.xlu1 %399 }
 0x30c   :  { %289 = vadd.xlane.f32.xlu0 %v288_v60  ;;  %v405_v9 = vsel %vm176_vm2, %v400_v63, 0 }
 0x30e   :  { %v1446_v61 = vpop.eup %1445 }
 0x30f   :  { %v291_v62 = vsel %vm176_vm2, %v1446_v61, 0.0 }
 0x310   :  { %292 = vadd.xlane.f32.xlu1 %v291_v62 }
 0x321   :  { %449 = vrot.lane.b32.xlu1 %v1705_v14, %s1584_s1 }
 0x322   :  { %397 = vrot.lane.b32.xlu0 %v1702_v11, %s1585_s17 }
 0x325   :  { %447 = vrot.lane.b32.xlu1 %v1705_v14, %s1585_s17 }
 0x399   :  { %v290_v1 = vpop.xlane.xlu0 %289 }
 0x39a   :  { %1447 = vrcp.f32 %v290_v1 }
 0x39d   :  { %v293_v2 = vpop.xlane.xlu1 %292  ;;  %v398_v16 = vpop.permute.xlu0 %397 }
 0x39e   :  { %1449 = vrcp.f32 %v293_v2 }
 0x3a1   :  { %v450_v12 = vpop.permute.xlu1 %449 }
 0x3a2   :  { %v455_v15 = vsel %vm176_vm2, %v450_v12, 0 }
 0x3a4   :  { %v1448_v5 = vpop.eup %1447 }
 0x3a5   :  { %v296_v6 = vmul.f32 %v1448_v5, %v1444_v59  ;;  %v448_v17 = vpop.permute.xlu1 %447 }
 0x3a7   :  { %v298_v7 = vpack.c.bf16 %v296_v6, %v296_v6 }
 0x3a8   :  { %v1450_v8 = vpop.eup %1449 }
 0x3a9   :  { %v297_v10 = vmul.f32 %v1450_v8, %v1446_v61  ;;  %1312 = vmatmul.mubr.msk.bf16.vlgmr.msra.gmra.mrb[4].mxu1 %vm176_vm2, %v298_v7 }
 0x3aa   :  { %1322 = vmatpush3.bf16.xpose.msra.mxu1 %v405_v9  ;;  %1323 = vmatprep.mubr.msk.bf16.mxu1 %vm1581_vm0, %v1580_v0 }
 0x3ab   :  { %v299_v13 = vpack.c.bf16 %v297_v10, %v297_v10  ;;  %1333 = vmatprep.subr.bf16.mxu1 %v1580_v0 }
 0x3ad   :  { %1318 = vmatmul.mubr.msk.bf16.vlgmr.msra.gmra.mrb[8].mxu0 %vm176_vm2, %v299_v13 }
 0x3ae   :  { %1328 = vmatpush3.bf16.xpose.msra.mxu0 %v455_v15  ;;  %1329 = vmatprep.mubr.msk.bf16.mxu0 %vm1581_vm0, %v1580_v0 }
 0x3af   :  { %1339 = vmatprep.subr.bf16.mxu0 %v1580_v0 }
 0x3b1   :  { %1324 = vmatmul.mubr.msk.bf16.vlgmr.msra.gmra.mrb[8].mxu1 %vm176_vm2, %v398_v16 }
 0x3b2   :  { %1335 = vmatprep.mubr.msk.bf16.mxu1 %vm1581_vm0, %v1580_v0 }
 0x3b5   :  { %1330 = vmatmul.mubr.msk.bf16.vlgmr.msra.gmra.mrb[12].mxu0 %vm176_vm2, %v448_v17 }
 0x3b6   :  { %1341 = vmatprep.mubr.msk.bf16.mxu0 %vm1581_vm0, %v1580_v0 }
 0x47c   :  { %v1769_v18 = vpop.f32.mrb[4].mxu1 }
 0x47d   :  { %v1313_v19 = vpop.f32.mrb[5].mxu1 }
 0x47e   :  { %v346_v20 = vpop.f32.mrb[6].mxu1 }
 0x47f   :  { %v1314_v21 = vpop.f32.mrb[7].mxu1 }
 0x480   :  { %v1771_v22 = vpop.f32.mrb[8].mxu0 }
 0x481   :  { %v1319_v23 = vpop.f32.mrb[9].mxu0 }
 0x482   :  { %v394_v24 = vpop.f32.mrb[10].mxu0 }
 0x483   :  { %v1320_v26 = vpop.f32.mrb[11].mxu0 }
 0x484   :  { %v441_v27 = vpop.f32.mrb[8].mxu1 }
 0x485   :  { %v497_v28 = vmul.f32 0.35355338, %v441_v27  ;;  %v1325_v29 = vpop.f32.mrb[9].mxu1 }
 0x486   :  { %v444_v31 = vpop.f32.mrb[10].mxu1 }
 0x487   :  { %v1326_v33 = vpop.f32.mrb[11].mxu1  ;;  %v499_v34 = vadd.f32 %v497_v28, %v1730_v32 }
 0x488   :  { %v491_v35 = vpop.f32.mrb[12].mxu0 }
 0x489   :  { %v498_v36 = vmul.f32 0.35355338, %v491_v35  ;;  %v1331_v37 = vpop.f32.mrb[13].mxu0  ;;  %v501_v38 = vsel %vm176_vm2, %v499_v34, -inf }
 0x48a   :  { %502 = vmax.xlane.f32.xlu1 %v501_v38  ;;  %v494_v39 = vpop.f32.mrb[14].mxu0 }
 0x48b   :  { %v1332_v41 = vpop.f32.mrb[15].mxu0  ;;  %v500_v42 = vadd.f32 %v498_v36, %v1734_v40 }
 0x48d   :  { %v504_v43 = vsel %vm176_vm2, %v500_v42, -inf }
 0x48e   :  { %505 = vmax.xlane.f32.xlu0 %v504_v43 }
 0x49b   :  { %525 = vrot.lane.b32.xlu1 %v1702_v11, %s1586_s18 }
 0x49f   :  { %623 = vrot.lane.b32.xlu1 %v1702_v11, %s1587_s19 }
 0x4a4   :  { %573 = vrot.lane.b32.xlu0 %v1705_v14, %s1586_s18 }
 0x4a8   :  { %621 = vrot.lane.b32.xlu0 %v1702_v11, %s1588_s21 }
 0x517   :  { %v503_v44 = vpop.xlane.xlu1 %502 }
 0x518   :  { %v507_v45 = vsub.f32 %v499_v34, %v503_v44 }
 0x51a   :  { %v509_v46 = vmul.f32 1.442695, %v507_v45 }
 0x51b   :  { %v526_v47 = vpop.permute.xlu1 %525  ;;  %v506_v48 = vpop.xlane.xlu0 %505 }
 0x51c   :  { %1451 = vpow2.f32 %v509_v46  ;;  %v531_v49 = vsel %vm305_vm3, %v526_v47, 0  ;;  %v508_v50 = vsub.f32 %v500_v42, %v506_v48 }
 0x51d   :  { %1334 = vmatpush3.bf16.msra.mxu1 %v531_v49 }
 0x51e   :  { %v511_v51 = vmul.f32 1.442695, %v508_v50  ;;  %1345 = vmatprep.subr.bf16.mxu1 %v1580_v0 }
 0x51f   :  { %v574_v52 = vpop.permute.xlu0 %573  ;;  %v624_v58 = vpop.permute.xlu1 %623 }
 0x520   :  { %1453 = vpow2.f32 %v511_v51  ;;  %v579_v53 = vsel %vm305_vm3, %v574_v52, 0  ;;  %v629_v2 = vsel %vm176_vm2, %v624_v58, 0 }
 0x521   :  { %1340 = vmatpush3.bf16.msra.mxu0 %v579_v53 }
 0x522   :  { %1351 = vmatprep.subr.bf16.mxu0 %v1580_v0 }
 0x523   :  { %v622_v9 = vpop.permute.xlu0 %621 }
 0x526   :  { %v1452_v54 = vpop.eup %1451 }
 0x527   :  { %v513_v55 = vsel %vm176_vm2, %v1452_v54, 0.0 }
 0x528   :  { %514 = vadd.xlane.f32.xlu1 %v513_v55 }
 0x52a   :  { %v1454_v56 = vpop.eup %1453 }
 0x52b   :  { %v516_v57 = vsel %vm176_vm2, %v1454_v56, 0.0 }
 0x52c   :  { %517 = vadd.xlane.f32.xlu1 %v516_v57 }
 0x53d   :  { %673 = vrot.lane.b32.xlu1 %v1705_v14, %s1587_s19 }
 0x541   :  { %671 = vrot.lane.b32.xlu1 %v1705_v14, %s1588_s21 }
 0x5b5   :  { %v515_v59 = vpop.xlane.xlu1 %514 }
 0x5b6   :  { %1455 = vrcp.f32 %v515_v59 }
 0x5b9   :  { %v518_v60 = vpop.xlane.xlu1 %517 }
 0x5ba   :  { %1457 = vrcp.f32 %v518_v60 }
 0x5bd   :  { %v674_v6 = vpop.permute.xlu1 %673 }
 0x5be   :  { %v679_v8 = vsel %vm176_vm2, %v674_v6, 0 }
 0x5c0   :  { %v1456_v61 = vpop.eup %1455 }
 0x5c1   :  { %v521_v62 = vmul.f32 %v1456_v61, %v1452_v54  ;;  %v672_v10 = vpop.permute.xlu1 %671 }
 0x5c3   :  { %v523_v63 = vpack.c.bf16 %v521_v62, %v521_v62 }
 0x5c4   :  { %v1458_v1 = vpop.eup %1457 }
 0x5c5   :  { %v522_v5 = vmul.f32 %v1458_v1, %v1454_v56  ;;  %1336 = vmatmul.mubr.msk.bf16.vlgmr.msra.gmra.mrb[12].mxu1 %vm176_vm2, %v523_v63 }
 0x5c6   :  { %1346 = vmatpush3.bf16.xpose.msra.mxu1 %v629_v2  ;;  %1347 = vmatprep.mubr.msk.bf16.mxu1 %vm1581_vm0, %v1580_v0 }
 0x5c7   :  { %v524_v7 = vpack.c.bf16 %v522_v5, %v522_v5  ;;  %1357 = vmatprep.subr.bf16.mxu1 %v1580_v0 }
 0x5c9   :  { %1342 = vmatmul.mubr.msk.bf16.vlgmr.msra.gmra.mrb[16].mxu0 %vm176_vm2, %v524_v7 }
 0x5ca   :  { %1352 = vmatpush3.bf16.xpose.msra.mxu0 %v679_v8  ;;  %1353 = vmatprep.mubr.msk.bf16.mxu0 %vm1581_vm0, %v1580_v0 }
 0x5cb   :  { %1363 = vmatprep.subr.bf16.mxu0 %v1580_v0 }
 0x5cd   :  { %1348 = vmatmul.mubr.msk.bf16.vlgmr.msra.gmra.mrb[16].mxu1 %vm176_vm2, %v622_v9 }
 0x5ce   :  { %1359 = vmatprep.mubr.msk.bf16.mxu1 %vm1581_vm0, %v1580_v0 }
 0x5d1   :  { %1354 = vmatmul.mubr.msk.bf16.vlgmr.msra.gmra.mrb[20].mxu0 %vm176_vm2, %v672_v10 }
 0x5d2   :  { %1365 = vmatprep.mubr.msk.bf16.mxu0 %vm1581_vm0, %v1580_v0 }
 0x698   :  { %v1805_v12 = vpop.f32.mrb[12].mxu1 }
 0x699   :  { %v1337_v13 = vpop.f32.mrb[13].mxu1 }
 0x69a   :  { %v570_v15 = vpop.f32.mrb[14].mxu1 }
 0x69b   :  { %v1338_v16 = vpop.f32.mrb[15].mxu1 }
 0x69c   :  { %v1807_v17 = vpop.f32.mrb[16].mxu0 }
 0x69d   :  { %v1424_v19 = vpack.i.bf16 %v1807_v17, %v1805_v12  ;;  %v1343_v20 = vpop.f32.mrb[17].mxu0 }
 0x69e   :  { %v618_v21 = vpop.f32.mrb[18].mxu0 }
 0x69f   :  { %v1344_v23 = vpop.f32.mrb[19].mxu0 }
 0x6a0   :  { %v665_v24 = vpop.f32.mrb[16].mxu1 }
 0x6a1   :  { %v721_v26 = vmul.f32 0.35355338, %v665_v24  ;;  %v1349_v27 = vpop.f32.mrb[17].mxu1 }
 0x6a2   :  { %v668_v28 = vpop.f32.mrb[18].mxu1 }
 0x6a3   :  { %v1350_v29 = vpop.f32.mrb[19].mxu1  ;;  %v723_v31 = vadd.f32 %v721_v26, %v1730_v32 }
 0x6a4   :  { %v715_v33 = vpop.f32.mrb[20].mxu0 }
 0x6a5   :  { %v722_v34 = vmul.f32 0.35355338, %v715_v33  ;;  %v1355_v35 = vpop.f32.mrb[21].mxu0  ;;  %v725_v36 = vsel %vm176_vm2, %v723_v31, -inf }
 0x6a6   :  { %726 = vmax.xlane.f32.xlu0 %v725_v36  ;;  %v718_v37 = vpop.f32.mrb[22].mxu0 }
 0x6a7   :  { %v1356_v38 = vpop.f32.mrb[23].mxu0  ;;  %v724_v39 = vadd.f32 %v722_v34, %v1734_v40 }
 0x6a9   :  { %v728_v41 = vsel %vm176_vm2, %v724_v39, -inf }
 0x6aa   :  { %729 = vmax.xlane.f32.xlu1 %v728_v41 }
 0x6bb   :  { %749 = vrot.lane.b32.xlu1 %v1702_v11, %s1589_s22 }
 0x6bf   :  { %847 = vrot.lane.b32.xlu1 %v1702_v11, %s1590_s23 }
 0x6c3   :  { %897 = vrot.lane.b32.xlu1 %v1705_v14, %s1590_s23 }
 0x6c7   :  { %895 = vrot.lane.b32.xlu1 %v1705_v14, %s1591_s25 }
 0x733   :  { %v727_v42 = vpop.xlane.xlu0 %726 }
 0x734   :  { %v731_v43 = vsub.f32 %v723_v31, %v727_v42 }
 0x736   :  { %v733_v44 = vmul.f32 1.442695, %v731_v43 }
 0x737   :  { %v730_v45 = vpop.xlane.xlu1 %729 }
 0x738   :  { %1459 = vpow2.f32 %v733_v44  ;;  %v732_v46 = vsub.f32 %v724_v39, %v730_v45 }
 0x73a   :  { %v735_v47 = vmul.f32 1.442695, %v732_v46 }
 0x73b   :  { %v750_v48 = vpop.permute.xlu1 %749 }
 0x73c   :  { %1461 = vpow2.f32 %v735_v47  ;;  %v755_v49 = vsel %vm305_vm3, %v750_v48, 0 }
 0x73d   :  { %1358 = vmatpush3.bf16.msra.mxu1 %v755_v49 }
 0x73e   :  { %1369 = vmatprep.subr.bf16.mxu1 %v1580_v0 }
 0x73f   :  { %v848_v59 = vpop.permute.xlu1 %847 }
 0x740   :  { %v853_v63 = vsel %vm176_vm2, %v848_v59, 0  ;;  %v1442_v59 = vld [vmem:[#allocation7 + $0x8] sm:$0xff]  }
 0x742   :  { %v1460_v50 = vpop.eup %1459 }
 0x743   :  { %v737_v51 = vsel %vm176_vm2, %v1460_v50, 0.0  ;;  %v898_v2 = vpop.permute.xlu1 %897 }
 0x744   :  { %738 = vadd.xlane.f32.xlu0 %v737_v51  ;;  %v903_v6 = vsel %vm176_vm2, %v898_v2, 0 }
 0x746   :  { %v1462_v52 = vpop.eup %1461 }
 0x747   :  { %v740_v53 = vsel %vm176_vm2, %v1462_v52, 0.0  ;;  %v896_v8 = vpop.permute.xlu1 %895 }
 0x748   :  { %741 = vadd.xlane.f32.xlu0 %v740_v53 }
 0x75e   :  { %797 = vrot.lane.b32.xlu0 %v1705_v14, %s1589_s22 }
 0x762   :  { %845 = vrot.lane.b32.xlu0 %v1702_v11, %s1591_s25 }
 0x7d1   :  { %v739_v54 = vpop.xlane.xlu0 %738 }
 0x7d2   :  { %1463 = vrcp.f32 %v739_v54 }
 0x7d5   :  { %v742_v55 = vpop.xlane.xlu0 %741 }
 0x7d6   :  { %1465 = vrcp.f32 %v742_v55 }
 0x7d9   :  { %v798_v56 = vpop.permute.xlu0 %797 }
 0x7da   :  { %v803_v57 = vsel %vm305_vm3, %v798_v56, 0 }
 0x7db   :  { %1364 = vmatpush3.bf16.msra.mxu0 %v803_v57 }
 0x7dc   :  { %v1464_v58 = vpop.eup %1463  ;;  %1375 = vmatprep.subr.bf16.mxu0 %v1580_v0 }
 0x7dd   :  { %v745_v60 = vmul.f32 %v1464_v58, %v1460_v50  ;;  %v846_v7 = vpop.permute.xlu0 %845 }
 0x7df   :  { %v747_v61 = vpack.c.bf16 %v745_v60, %v745_v60 }
 0x7e0   :  { %v1466_v62 = vpop.eup %1465 }
 0x7e1   :  { %v746_v1 = vmul.f32 %v1466_v62, %v1462_v52  ;;  %1360 = vmatmul.mubr.msk.bf16.vlgmr.msra.gmra.mrb[20].mxu1 %vm176_vm2, %v747_v61 }
 0x7e2   :  { %1370 = vmatpush3.bf16.xpose.msra.mxu1 %v853_v63  ;;  %1371 = vmatprep.mubr.msk.bf16.mxu1 %vm1581_vm0, %v1580_v0 }
 0x7e3   :  { %v748_v5 = vpack.c.bf16 %v746_v1, %v746_v1  ;;  %1381 = vmatprep.subr.bf16.mxu1 %v1580_v0 }
 0x7e5   :  { %1366 = vmatmul.mubr.msk.bf16.vlgmr.msra.gmra.mrb[24].mxu0 %vm176_vm2, %v748_v5 }
 0x7e6   :  { %1376 = vmatpush3.bf16.xpose.msra.mxu0 %v903_v6  ;;  %1377 = vmatprep.mubr.msk.bf16.mxu0 %vm1581_vm0, %v1580_v0 }
 0x7e7   :  { %1387 = vmatprep.subr.bf16.mxu0 %v1580_v0 }
 0x7e9   :  { %1372 = vmatmul.mubr.msk.bf16.vlgmr.msra.gmra.mrb[24].mxu1 %vm176_vm2, %v846_v7 }
 0x7ea   :  { %1383 = vmatprep.mubr.msk.bf16.mxu1 %vm1581_vm0, %v1580_v0 }
 0x7ed   :  { %1378 = vmatmul.mubr.msk.bf16.vlgmr.msra.gmra.mrb[28].mxu0 %vm176_vm2, %v896_v8 }
 0x7ee   :  { %1389 = vmatprep.mubr.msk.bf16.mxu0 %vm1581_vm0, %v1580_v0 }
 0x8b4   :  { %v791_v9 = vpop.f32.mrb[20].mxu1 }
 0x8b5   :  { %v1361_v10 = vpop.f32.mrb[21].mxu1 }
 0x8b6   :  { %v794_v13 = vpop.f32.mrb[22].mxu1 }
 0x8b7   :  { %v1362_v15 = vpop.f32.mrb[23].mxu1 }
 0x8b8   :  { %v839_v16 = vpop.f32.mrb[24].mxu0 }
 0x8b9   :  { %v1429_v20 = vpack.i.bf16 %v839_v16, %v791_v9  ;;  %v1367_v21 = vpop.f32.mrb[25].mxu0 }
 0x8ba   :  { %v842_v23 = vpop.f32.mrb[26].mxu0 }
 0x8bb   :  { %v1368_v24 = vpop.f32.mrb[27].mxu0 }
 0x8bc   :  { %v889_v26 = vpop.f32.mrb[24].mxu1 }
 0x8bd   :  { %v945_v27 = vmul.f32 0.35355338, %v889_v26  ;;  %v1373_v28 = vpop.f32.mrb[25].mxu1 }
 0x8be   :  { %v892_v29 = vpop.f32.mrb[26].mxu1 }
 0x8bf   :  { %v1374_v31 = vpop.f32.mrb[27].mxu1  ;;  %v947_v33 = vadd.f32 %v945_v27, %v1730_v32 }
 0x8c0   :  { %v939_v34 = vpop.f32.mrb[28].mxu0 }
 0x8c1   :  { %v946_v35 = vmul.f32 0.35355338, %v939_v34  ;;  %v1379_v36 = vpop.f32.mrb[29].mxu0  ;;  %v949_v37 = vsel %vm176_vm2, %v947_v33, -inf }
 0x8c2   :  { %950 = vmax.xlane.f32.xlu0 %v949_v37  ;;  %v942_v38 = vpop.f32.mrb[30].mxu0 }
 0x8c3   :  { %v1380_v39 = vpop.f32.mrb[31].mxu0  ;;  %v948_v41 = vadd.f32 %v946_v35, %v1734_v40 }
 0x8c5   :  { %v952_v42 = vsel %vm176_vm2, %v948_v41, -inf }
 0x8c6   :  { %953 = vmax.xlane.f32.xlu1 %v952_v42 }
 0x8d7   :  { %973 = vrot.lane.b32.xlu1 %v1702_v11, %s1592_s26 }
 0x8db   :  { %1425 = vrot.lane.b32.xlu1 %v1424_v19, %s1576_s20 }
 0x8df   :  { %1430 = vrot.lane.b32.xlu1 %v1429_v20, %s1593_s27 }
 0x94f   :  { %v951_v32 = vpop.xlane.xlu0 %950 }
 0x950   :  { %v955_v43 = vsub.f32 %v947_v33, %v951_v32  ;;  %v1106_v33 = vld [vmem:[%s1902_s5] sm:$0x7]  ;;  %s1595_s5 = smov [#allocation8]  }
 0x951   :  { %v1110_v34 = vrot.slane %v1106_v33, %v1727_v30  ;;  %s1215_s7 = sshll.u32 %s1595_s5, 4  ;;  %s1216_s7 = int_to_ptr.vmem [resolvable:$true] %s1215_s7 }
 0x952   :  { %v957_v44 = vmul.f32 1.442695, %v955_v43  ;;  %s1545_s8 = scalar_lea.vmem %s1216_s7, 256  ;;  %p1550_p11 = scmp.lt.s32.totalorder %s1216_s7, %s1216_s7 }
 0x953   :  { %v954_v45 = vpop.xlane.xlu1 %953  ;;  %p1546_p10 = scmp.ne.s32.totalorder %s1216_s7, %s1545_s8  ;;  %p1551_p12 = scmp.lt.s32.totalorder %s1545_s8, %s1545_s8 }
 0x954   :  { %1467 = vpow2.f32 %v957_v44  ;;  %v956_v46 = vsub.f32 %v948_v41, %v954_v45 }
 0x955   :  { %p1552_p13 = por %p1551_p12, %p1550_p11 }
 0x956   :  { %v959_v40 = vmul.f32 1.442695, %v956_v46 }
 0x957   :  { %v974_v47 = vpop.permute.xlu1 %973  ;;  %p1553_p0 = pnand %p1552_p13, %p1546_p10 }
 0x958   :  { %1469 = vpow2.f32 %v959_v40  ;;  %v979_v48 = vsel %vm305_vm3, %v974_v47, 0 }
 0x959   :  { %1382 = vmatpush3.bf16.msra.mxu1 %v979_v48 }
 0x95a   :  { %1393 = vmatprep.subr.bf16.mxu1 %v1580_v0 }
 0x95b   :  { %v1426_v8 = vpop.permute.xlu1 %1425 }
 0x95c   :  { %v1428_v10 = vunpack.i.h.bf16 %v1426_v8  ;;  %v1427_v13 = vunpack.i.l.bf16 %v1426_v8 }
 0x95e   :  { %v1468_v11 = vpop.eup %1467  ;;  %v1094_v20 = vsel %vm176_vm2, %v1771_v22, %v1428_v10  ;;  %v1093_v21 = vsel %vm176_vm2, %v1769_v18, %v1427_v13 }
 0x95f   :  { %v961_v12 = vsel %vm176_vm2, %v1468_v11, 0.0  ;;  %v1431_v9 = vpop.permute.xlu1 %1430 }
 0x960   :  { %962 = vadd.xlane.f32.xlu0 %v961_v12  ;;  %v1433_v15 = vunpack.i.h.bf16 %v1431_v9  ;;  %v1432_v16 = vunpack.i.l.bf16 %v1431_v9 }
 0x962   :  { %v1470_v17 = vpop.eup %1469  ;;  %v1096_v26 = vsel %vm1095_vm4, %v1093_v21, %v1432_v16  ;;  %v1097_v27 = vsel %vm1095_vm4, %v1094_v20, %v1433_v15 }
 0x963   :  { %v964_v19 = vsel %vm176_vm2, %v1470_v17, 0.0 }
 0x964   :  { %965 = vadd.xlane.f32.xlu0 %v964_v19 }
 0x97a   :  { %1021 = vrot.lane.b32.xlu0 %v1705_v14, %s1592_s26  ;;  %v1441_v14 = vld [vmem:[#allocation7] sm:$0xff]  }
 0x9ed   :  { %v963_v49 = vpop.xlane.xlu0 %962 }
 0x9ee   :  { %1471 = vrcp.f32 %v963_v49 }
 0x9f1   :  { %v966_v50 = vpop.xlane.xlu0 %965 }
 0x9f2   :  { %1473 = vrcp.f32 %v966_v50 }
 0x9f5   :  { %v1022_v51 = vpop.permute.xlu0 %1021 }
 0x9f6   :  { %v1027_v52 = vsel %vm305_vm3, %v1022_v51, 0  ;;  %v1198_v51 = vsub.s32 1, %v1723_v25 }
 0x9f7   :  { %1388 = vmatpush3.bf16.msra.mxu0 %v1027_v52  ;;  %v1204_v52 = vsub.s32 2, %v1723_v25 }
 0x9f8   :  { %v1472_v53 = vpop.eup %1471 }
 0x9f9   :  { %v969_v54 = vmul.f32 %v1472_v53, %v1468_v11  ;;  %v1199_v53 = vrot.slane %v1106_v33, %v1198_v51 }
 0x9fb   :  { %v971_v55 = vpack.c.bf16 %v969_v54, %v969_v54 }
 0x9fc   :  { %v1474_v56 = vpop.eup %1473 }
 0x9fd   :  { %v970_v57 = vmul.f32 %v1474_v56, %v1470_v17  ;;  %1384 = vmatmul.mubr.msk.bf16.vlgmr.msra.gmra.mrb[28].mxu1 %vm176_vm2, %v971_v55  ;;  %v1205_v55 = vrot.slane %v1106_v33, %v1204_v52 }
 0x9fe   :  { %1397 = vmatprep.mubr.msk.bf16.mxu1 %vm1581_vm0, %v1580_v0  ;;  %1394 = vmatpush3.bf16.msra.mxu1 %v1441_v14 }
 0x9ff   :  { %v972_v58 = vpack.c.bf16 %v970_v57, %v970_v57  ;;  %1395 = vmatprep.subr.bf16.mxu1 %v1580_v0 }
 0xa01   :  { %1390 = vmatmul.mubr.msk.bf16.vlgmr.msra.gmra.mrb[32].mxu0 %vm176_vm2, %v972_v58 }
 0xa02   :  { %1396 = vmatpush3.bf16.msra.mxu1 %v1442_v59 }
 0xad0   :  { %v1015_v60 = vpop.f32.mrb[28].mxu1 }
 0xad1   :  { %v1385_v61 = vpop.f32.mrb[29].mxu1 }
 0xad2   :  { %v1018_v62 = vpop.f32.mrb[30].mxu1 }
 0xad3   :  { %v1386_v63 = vpop.f32.mrb[31].mxu1 }
 0xad4   :  { %v1063_v1 = vpop.f32.mrb[32].mxu0 }
 0xad5   :  { %v1434_v2 = vpack.i.bf16 %v1063_v1, %v1015_v60  ;;  %v1391_v5 = vpop.f32.mrb[33].mxu0 }
 0xad6   :  { %v1066_v6 = vpop.f32.mrb[34].mxu0 }
 0xad7   :  { %1435 = vrot.lane.b32.xlu0 %v1434_v2, %s1594_s28  ;;  %v1392_v7 = vpop.f32.mrb[35].mxu0 }
 0xb49   :  { %v1436_v0 = vpop.permute.xlu0 %1435 }
 0xb4a   :  { %v1438_v23 = vunpack.i.h.bf16 %v1436_v0  ;;  %v1437_v24 = vunpack.i.l.bf16 %v1436_v0 }
 0xb4c   :  { %v1100_v28 = vsel %vm1098_vm5, %v1097_v27, %v1438_v23  ;;  %v1099_v29 = vsel %vm1098_vm5, %v1096_v26, %v1437_v24 }
 0xb4d   :  { %v1101_v31 = vpack.c.bf16 %v1100_v28, %v1099_v29 }
 0xb4f   :  { %1398 = vmatmul.mubr.msk.bf16.vlgmr.msra.gmra.mrb[32].mxu1 %vm126_vm1, %v1101_v31 }
 0xc22   :  { %v1160_v35 = vpop.f32.mrb[32].mxu1 }
 0xc23   :  { %v1161_v22 = vadd.f32 %v1160_v35, %v1110_v34  ;;  %v1399_v36 = vpop.f32.mrb[33].mxu1 }
 0xc24   :  { %v1163_v37 = vpop.f32.mrb[34].mxu1 }
 0xc25   :  { %v1164_v18 = vadd.f32 %v1163_v37, %v1110_v34  ;;  %v1400_v38 = vpop.f32.mrb[35].mxu1  ;;  %v1167_v39 = vadd.f32 %v1161_v22, %v1691_v3 }
 0xc27   :  { %v1169_v41 = vsel %vm126_vm1, %v1167_v39, 0.0  ;;  %v1168_v42 = vadd.f32 %v1164_v18, %v1693_v4 }
 0xc28   :  { %1170 = vadd.xlane.f32.xlu1 %v1169_v41 }
 0xc29   :  { %v1172_v32 = vsel %vm126_vm1, %v1168_v42, 0.0 }
 0xc2a   :  { %1173 = vadd.xlane.f32.xlu0 %v1172_v32 }
 0xcb5   :  { %v1171_v43 = vpop.xlane.xlu1 %1170 }
 0xcb6   :  { %v1176_v44 = vmul.f32 0.03125, %v1171_v43 }
 0xcb7   :  { %v1174_v45 = vpop.xlane.xlu0 %1173 }
 0xcb8   :  { %v1178_v30 = vsub.f32 %v1167_v39, %v1176_v44  ;;  %v1177_v46 = vmul.f32 0.03125, %v1174_v45 }
 0xcba   :  { %v1179_v40 = vsub.f32 %v1168_v42, %v1177_v46  ;;  %v1180_v47 = vmul.f32 %v1178_v30, %v1178_v30 }
 0xcbc   :  { %v1182_v48 = vsel %vm126_vm1, %v1180_v47, 0.0  ;;  %v1181_v11 = vmul.f32 %v1179_v40, %v1179_v40 }
 0xcbd   :  { %1183 = vadd.xlane.f32.xlu0 %v1182_v48 }
 0xcbe   :  { %v1185_v3 = vsel %vm126_vm1, %v1181_v11, 0.0 }
 0xcbf   :  { %1186 = vadd.xlane.f32.xlu1 %v1185_v3 }
 0xd4a   :  { %v1184_v12 = vpop.xlane.xlu0 %1183 }
 0xd4b   :  { %v1188_v4 = vmul.f32 0.03125, %v1184_v12 }
 0xd4c   :  { %v1187_v17 = vpop.xlane.xlu1 %1186 }
 0xd4d   :  { %v1190_v19 = vadd.f32 1e-12, %v1188_v4  ;;  %v1189_v49 = vmul.f32 0.03125, %v1187_v17 }
 0xd4f   :  { %1475 = vrsqrt.f32 %v1190_v19  ;;  %v1191_v50 = vadd.f32 1e-12, %v1189_v49 }
 0xd51   :  { %1477 = vrsqrt.f32 %v1191_v50 }
 0xd59   :  { %v1476_v54 = vpop.eup %1475 }
 0xd5a   :  { %v1194_v56 = vmul.f32 %v1476_v54, %v1178_v30 }
 0xd5b   :  { %v1478_v57 = vpop.eup %1477 }
 0xd5c   :  { %v1195_v58 = vmul.f32 %v1478_v57, %v1179_v40  ;;  %v1200_v14 = vmul.f32 %v1199_v53, %v1194_v56 }
 0xd5e   :  { %v1201_v59 = vmul.f32 %v1199_v53, %v1195_v58  ;;  %v1206_v60 = vadd.f32 %v1205_v55, %v1200_v14 }
 0xd60   :  { %v1207_v61 = vadd.f32 %v1205_v55, %v1201_v59  ;;  %1208 = vst.msk [vmem:[#allocation8] sm:$0xff] %vm126_vm1, %v1206_v60 }
 0xd62   :  { %1209 = vst.msk [vmem:[#allocation8 + $0x8] sm:$0xff] %vm126_vm1, %v1207_v61 }
 0xd63   :  { %1556 = shalt.err (!%p1553_p0)
}
 0xd64   :  { %s1557_s24 = scalar_lea.hbm %s1903_s6, 256 }
 0xd65   :  { %p1558_p1 = scmp.ne.s32.totalorder %s1903_s6, %s1557_s24  ;;  %p1561_p2 = scmp.lt.u32.totalorder %s1557_s24, %s1903_s6 }
 0xd67   :  { %p1563_p3 = pnand %p1561_p2, %p1558_p1 }
 0xd69   :  { %1566 = shalt.err (!%p1563_p3)
}
 0xd6a   :  { %1221 = dma.vmem_to_hbm [thread:$0]  %s1216_s7, 256, %s1903_s6, [#allocation4], %s1575_s3, %s1575_s3, %s1576_s20  }
 0xd6b   :  { %1571 = dma.done.wait [#allocation4], 256  }
 0xd6c   :  { %1572 = vsyncadd [#allocation4], 4294967040 }
 0xd6d   :  { %1225 = vsyncpa [#allocation3], 1 }
 0xd6e   :  { %1226 = vsyncpa [#allocation6], 1 }
 0xd6f   :  { %1227 = vsyncpa [#allocation4], 1 }

</bundles_post_ra>
